<compile_context>
chip_gen: v7x
topology: tpu7x:2x2x1
jax: 0.10.0
libtpu: 0.0.40
codegen_flags: <defaults>
</compile_context>

<pallas_src>
import jax
import jax.numpy as jnp
from jax.experimental import pallas as pl
from jax.experimental.pallas import tpu as pltpu


def _cdiv(a, b):
    return -(-a // b)


def _round_up(x, m):
    return ((x + m - 1) // m) * m


def _make_cblinear_kernel(n_chunks):
    """Kernel: one dot + bias + store per channel chunk (no shared acc)."""

    def kernel(x_ref, *rest):
        w_refs = rest[:n_chunks]
        b_refs = rest[n_chunks:2 * n_chunks]
        o_refs = rest[2 * n_chunks:]
        x = x_ref[...]                                   # (C1, ts)
        for w_ref, b_ref, o_ref in zip(w_refs, b_refs, o_refs):
            acc = jnp.dot(w_ref[...], x,                 # (c2_i, ts) f32
                          preferred_element_type=jnp.float32)
            acc = acc + b_ref[...]                       # bias over lane dim
            o_ref[...] = acc.astype(o_ref.dtype)

    return kernel


def _vmem_budget():
    """(streaming budget, compiler limit) derived from physical VMEM."""
    try:
        cap = int(pltpu.get_tpu_info().vmem_capacity_bytes)
    except Exception:
        cap = 64 * 1024 * 1024  # conservative (v7x-sized) fallback
    limit = int(cap * 0.75)          # 96 MiB on 128 MiB parts, 48 MiB on v7x
    budget = int(cap * 0.40)         # ~51 MiB on v5e/v6e, ~25 MiB on v7x
    return budget, limit


def cblinear_nchw(x, weight, bias, c2s, *,
                  compute_dtype=None,
                  vmem_budget_bytes=None,
                  vmem_limit_bytes=None,
                  min_grid_programs=8):
    """1x1 conv (bias=True) + channel split, computed directly in NCHW.

    x:      (N, C1, H, W)
    weight: (C2sum, C1)   -- torch conv weight (C2sum, C1, 1, 1) squeezed
    bias:   (C2sum,)
    returns a tuple of (N, c2, H, W) arrays, one per entry of c2s.
    """
    c2s = tuple(int(c) for c in c2s)
    n_chunks = len(c2s)
    N, C1, H, W = x.shape
    C2 = weight.shape[0]
    assert C2 == sum(c2s)
    HW = H * W

    out_dtype = x.dtype
    in_dtype = jnp.dtype(compute_dtype) if compute_dtype is not None else jnp.dtype(x.dtype)
    x_itemsize = in_dtype.itemsize
    out_itemsize = jnp.dtype(out_dtype).itemsize

    if vmem_budget_bytes is None or vmem_limit_bytes is None:
        auto_budget, auto_limit = _vmem_budget()
        vmem_budget_bytes = vmem_budget_bytes or auto_budget
        vmem_limit_bytes = vmem_limit_bytes or auto_limit

    # --- spatial tile size: num-tiles-first so padding waste is < 128 cols ---
    # Streams are double-buffered by Pallas; weights/biases revisit block (0,0)
    # every step (no re-DMA) but are allocated double-buffered, so count 2x.
    stream_bytes_per_col = 2 * (C1 * x_itemsize + C2 * out_itemsize)
    resident_bytes = 2 * (C2 * C1 * x_itemsize + C2 * 4)
    avail = max(vmem_budget_bytes - resident_bytes, 128 * stream_bytes_per_col)
    ts_max = max(128, (avail // stream_bytes_per_col) // 128 * 128)
    ts_max = min(ts_max, _round_up(HW, 128))

    num_tiles = _cdiv(HW, ts_max)
    # Keep enough grid programs for megacore (2 TCs on v7x) even at tiny N.
    want_tiles = min(_cdiv(min_grid_programs, N), _cdiv(HW, 128))
    num_tiles = max(num_tiles, max(want_tiles, 1))
    ts = _round_up(_cdiv(HW, num_tiles), 128)
    ts = max(128, min(ts, _round_up(HW, 128)))

    grid = (N, _cdiv(HW, ts))

    # --- operands (all reshapes are free; no padding, no extra HBM passes) ---
    x3d = x.reshape(N, C1, HW)
    if compute_dtype is not None:
        x3d = x3d.astype(in_dtype)

    w_chunks, b_chunks = [], []
    start = 0
    for c2 in c2s:
        w_chunks.append(weight[start:start + c2].astype(in_dtype))     # (c2, C1)
        b_chunks.append(bias[start:start + c2].astype(jnp.float32).reshape(c2, 1))
        start += c2

    in_specs = [pl.BlockSpec((None, C1, ts), lambda n, j: (n, 0, j))]
    for c2 in c2s:
        in_specs.append(pl.BlockSpec((c2, C1), lambda n, j: (0, 0)))
    for c2 in c2s:
        in_specs.append(pl.BlockSpec((c2, 1), lambda n, j: (0, 0)))

    out_shape = tuple(
        jax.ShapeDtypeStruct((N, c2, HW), out_dtype) for c2 in c2s)
    out_specs = tuple(
        pl.BlockSpec((None, c2, ts), lambda n, j: (n, 0, j)) for c2 in c2s)

    outs = pl.pallas_call(
        _make_cblinear_kernel(n_chunks),
        out_shape=out_shape,
        grid_spec=pltpu.PrefetchScalarGridSpec(
            num_scalar_prefetch=0,
            grid=grid,
            in_specs=in_specs,
            out_specs=out_specs,
        ),
        compiler_params=pltpu.CompilerParams(
            dimension_semantics=("parallel", "parallel"),
            vmem_limit_bytes=int(vmem_limit_bytes),
        ),
    )(x3d, *w_chunks, *b_chunks)

    return tuple(y.reshape(N, c2, H, W) for y, c2 in zip(outs, c2s))


class CBLinearPallas:
    """JAX/Pallas equivalent of CBLinear (k=1, s=1, p=autopad(1)=0, g=1)."""

    def __init__(self, c1, c2s, key):
        if isinstance(c1, list):
            assert len(c1) == 1
            c1 = c1[0]
        self.c1 = int(c1)
        self.c2s = tuple(int(c) for c in c2s)
        c2_sum = sum(self.c2s)
        kw, kb = jax.random.split(key)
        # Deterministic init (kaiming-uniform-ish bound like nn.Conv2d default)
        fan_in = self.c1  # k = 1
        bound = 1.0 / (fan_in ** 0.5)
        # torch conv weight (C2sum, C1, 1, 1) stored squeezed as (C2sum, C1).
        self.weight = jax.random.uniform(
            kw, (c2_sum, self.c1), jnp.float32, -bound, bound)
        self.bias = jax.random.uniform(
            kb, (c2_sum,), jnp.float32, -bound, bound)

    def __call__(self, x_nchw, *, compute_dtype=None):
        assert x_nchw.shape[1] == self.c1
        return cblinear_nchw(x_nchw, self.weight, self.bias, self.c2s,
                             compute_dtype=compute_dtype)


if __name__ == "__main__":
    key = jax.random.PRNGKey(0)
    k_x, k_p = jax.random.split(key)

    N, C1, H, W = 2, 4, 16, 16
    c2s = (8, 16)

    x = jax.random.normal(k_x, (N, C1, H, W), jnp.float32)
    module = CBLinearPallas(C1, c2s, k_p)

    outs = module(x)
    outs = jax.block_until_ready(outs)

    # Reference: plain-JAX 1x1 conv semantics (per-pixel linear map) + split.
    ref_full = (jnp.einsum("nchw,dc->ndhw", x, module.weight)
                + module.bias[None, :, None, None])
    start = 0
    for o, c2 in zip(outs, c2s):
        r = ref_full[:, start:start + c2]
        start += c2
        assert o.shape == (N, c2, H, W), o.shape
        assert jnp.allclose(o, r, atol=1e-4, rtol=1e-4), float(
            jnp.max(jnp.abs(o - r)))

    print("KERNEL_OK")
</pallas_src>

<mosaic_0001>
module attributes {stable_mosaic.version = 11 : i64} {
  func.func @kernel(%arg0: i32, %arg1: i32, %arg2: memref<1x4x128xf32, #tpu.memory_space<vmem>>, %arg3: memref<8x4xf32, #tpu.memory_space<vmem>>, %arg4: memref<16x4xf32, #tpu.memory_space<vmem>>, %arg5: memref<8x1xf32, #tpu.memory_space<vmem>>, %arg6: memref<16x1xf32, #tpu.memory_space<vmem>>, %arg7: memref<1x8x128xf32, #tpu.memory_space<vmem>>, %arg8: memref<1x16x128xf32, #tpu.memory_space<vmem>>) attributes {dimension_semantics = [#tpu.dimension_semantics<parallel>, #tpu.dimension_semantics<parallel>], iteration_bounds = array<i64: 2, 2>, scalar_prefetch = 0 : i64, scratch_operands = 0 : i64, tpu.core_type = #tpu.core_type<tc>, window_params = [{transform_indices = @transform_0, window_bounds = array<i64: 1, 4, 128>}, {pipeline_mode = #tpu.pipeline_mode<synchronous>, transform_indices = @transform_1, window_bounds = array<i64: 8, 4>}, {pipeline_mode = #tpu.pipeline_mode<synchronous>, transform_indices = @transform_2, window_bounds = array<i64: 16, 4>}, {pipeline_mode = #tpu.pipeline_mode<synchronous>, transform_indices = @transform_3, window_bounds = array<i64: 8, 1>}, {pipeline_mode = #tpu.pipeline_mode<synchronous>, transform_indices = @transform_4, window_bounds = array<i64: 16, 1>}, {transform_indices = @transform_5, window_bounds = array<i64: 1, 8, 128>}, {transform_indices = @transform_6, window_bounds = array<i64: 1, 16, 128>}]} {
    %c0 = arith.constant 0 : index
    %c0_0 = arith.constant 0 : index
    %c0_1 = arith.constant 0 : index
    %0 = vector.load %arg2[%c0, %c0_0, %c0_1] : memref<1x4x128xf32, #tpu.memory_space<vmem>>, vector<1x4x128xf32>
    %1 = vector.shape_cast %0 : vector<1x4x128xf32> to vector<4x128xf32>
    %c0_2 = arith.constant 0 : index
    %c0_3 = arith.constant 0 : index
    %2 = vector.load %arg3[%c0_2, %c0_3] : memref<8x4xf32, #tpu.memory_space<vmem>>, vector<8x4xf32>
    %cst = arith.constant dense<0.000000e+00> : vector<8x128xf32>
    %3 = tpu.matmul %2, %1, %cst {dimension_numbers = #tpu.dot_dimension_numbers<[1], [0], [0], [1], [0, 0, 1, 1], [], []>} : vector<8x4xf32>, vector<4x128xf32>, vector<8x128xf32> -> vector<8x128xf32>
    %c0_4 = arith.constant 0 : index
    %c0_5 = arith.constant 0 : index
    %4 = vector.load %arg5[%c0_4, %c0_5] : memref<8x1xf32, #tpu.memory_space<vmem>>, vector<8x1xf32>
    %5 = vector.broadcast %4 : vector<8x1xf32> to vector<8x128xf32>
    %6 = arith.addf %3, %5 : vector<8x128xf32>
    %c0_6 = arith.constant 0 : index
    %c0_7 = arith.constant 0 : index
    %c0_8 = arith.constant 0 : index
    %7 = vector.load %arg7[%c0_6, %c0_7, %c0_8] : memref<1x8x128xf32, #tpu.memory_space<vmem>>, vector<1x8x128xf32>
    %8 = vector.shape_cast %7 : vector<1x8x128xf32> to vector<8x128xf32>
    %9 = vector.shape_cast %6 : vector<8x128xf32> to vector<1x8x128xf32>
    tpu.vector_store %arg7[%c0_6, %c0_7, %c0_8], %9 {strides = array<i32>} : memref<1x8x128xf32, #tpu.memory_space<vmem>>, vector<1x8x128xf32>,
    %c0_9 = arith.constant 0 : index
    %c0_10 = arith.constant 0 : index
    %10 = vector.load %arg4[%c0_9, %c0_10] : memref<16x4xf32, #tpu.memory_space<vmem>>, vector<16x4xf32>
    %cst_11 = arith.constant dense<0.000000e+00> : vector<16x128xf32>
    %11 = tpu.matmul %10, %1, %cst_11 {dimension_numbers = #tpu.dot_dimension_numbers<[1], [0], [0], [1], [0, 0, 1, 1], [], []>} : vector<16x4xf32>, vector<4x128xf32>, vector<16x128xf32> -> vector<16x128xf32>
    %c0_12 = arith.constant 0 : index
    %c0_13 = arith.constant 0 : index
    %12 = vector.load %arg6[%c0_12, %c0_13] : memref<16x1xf32, #tpu.memory_space<vmem>>, vector<16x1xf32>
    %13 = vector.broadcast %12 : vector<16x1xf32> to vector<16x128xf32>
    %14 = arith.addf %11, %13 : vector<16x128xf32>
    %c0_14 = arith.constant 0 : index
    %c0_15 = arith.constant 0 : index
    %c0_16 = arith.constant 0 : index
    %15 = vector.load %arg8[%c0_14, %c0_15, %c0_16] : memref<1x16x128xf32, #tpu.memory_space<vmem>>, vector<1x16x128xf32>
    %16 = vector.shape_cast %15 : vector<1x16x128xf32> to vector<16x128xf32>
    %17 = vector.shape_cast %14 : vector<16x128xf32> to vector<1x16x128xf32>
    tpu.vector_store %arg8[%c0_14, %c0_15, %c0_16], %17 {strides = array<i32>} : memref<1x16x128xf32, #tpu.memory_space<vmem>>, vector<1x16x128xf32>,
    return
  }
  func.func @transform_0(%arg0: i32, %arg1: i32) -> (i32, i32, i32) {
    %c0_i32 = arith.constant 0 : i32
    %c0_i32_0 = arith.constant 0 : i32
    return %arg0, %c0_i32, %arg1 : i32, i32, i32
  }
  func.func @transform_1(%arg0: i32, %arg1: i32) -> (i32, i32) {
    %c0_i32 = arith.constant 0 : i32
    %c0_i32_0 = arith.constant 0 : i32
    %c0_i32_1 = arith.constant 0 : i32
    return %c0_i32, %c0_i32_0 : i32, i32
  }
  func.func @transform_2(%arg0: i32, %arg1: i32) -> (i32, i32) {
    %c0_i32 = arith.constant 0 : i32
    %c0_i32_0 = arith.constant 0 : i32
    %c0_i32_1 = arith.constant 0 : i32
    return %c0_i32, %c0_i32_0 : i32, i32
  }
  func.func @transform_3(%arg0: i32, %arg1: i32) -> (i32, i32) {
    %c0_i32 = arith.constant 0 : i32
    %c0_i32_0 = arith.constant 0 : i32
    %c0_i32_1 = arith.constant 0 : i32
    return %c0_i32, %c0_i32_0 : i32, i32
  }
  func.func @transform_4(%arg0: i32, %arg1: i32) -> (i32, i32) {
    %c0_i32 = arith.constant 0 : i32
    %c0_i32_0 = arith.constant 0 : i32
    %c0_i32_1 = arith.constant 0 : i32
    return %c0_i32, %c0_i32_0 : i32, i32
  }
  func.func @transform_5(%arg0: i32, %arg1: i32) -> (i32, i32, i32) {
    %c0_i32 = arith.constant 0 : i32
    %c0_i32_0 = arith.constant 0 : i32
    return %arg0, %c0_i32, %arg1 : i32, i32, i32
  }
  func.func @transform_6(%arg0: i32, %arg1: i32) -> (i32, i32, i32) {
    %c0_i32 = arith.constant 0 : i32
    %c0_i32_0 = arith.constant 0 : i32
    return %arg0, %c0_i32, %arg1 : i32, i32, i32
  }
}

</mosaic_0001>

<bundles_post_ra>
// kernel: tpu_custom_call.1
= control target key start
LH: loop header
LB: loop body
LE: loop exit
PB: predicated region body
PF: predicated region fallthrough
CT: control target
= control target key end

     0   :  { %s1115_s0 = inlined_call_operand.vmem [shape: f32[2,4,256], index: 0, kind: input, shape index: {}]   ;;  %s1116_s1 = inlined_call_operand.vmem [shape: f32[8,4], index: 1, kind: input, shape index: {}]   ;;  %s1117_s2 = inlined_call_operand.vmem [shape: f32[16,4], index: 2, kind: input, shape index: {}]   ;;  %s1118_s3 = inlined_call_operand.vmem [shape: f32[8,1], index: 3, kind: input, shape index: {}]   ;;  %s1119_s4 = inlined_call_operand.vmem [shape: f32[16,1], index: 4, kind: input, shape index: {}]   ;;  %s1120_s5 = inlined_call_operand.hbm [shape: f32[2,8,256], index: 5, kind: output, shape index: {0}]   ;;  %s1121_s6 = inlined_call_operand.hbm [shape: f32[2,16,256], index: 6, kind: output, shape index: {1}]  }
   0x1   :  { %1122 = sst [smem:[#allocation8_spill]] %s1115_s0 }
   0x2   :  { %1123 = sst [smem:[#allocation9_spill]] %s1118_s3 }
   0x3   :  { %12 = vsyncpa [#allocation3], 0 }
   0x4   :  { %14 = vsyncpa [#allocation3 + $0x1], 0 }
   0x5   :  { %15 = vsyncpa [#allocation5], 0 }
   0x6   :  { %17 = vsyncpa [#allocation5 + $0x1], 0  ;;  %s914_s21 = smov 0   ;;  %s916_s22 = smov 0  }
   0x7   :  { %s918_s23 = smov 0   ;;  %s920_s24 = smov 0  }
   0x8   :  { %s922_s25 = smov 0   ;;  %s924_s26 = smov 0  }
   0x9   :  { %s926_s27 = smov 0   ;;  %s928_s28 = smov 0  }
   0xa LB: > { %s622_s29 = sadd.s32 4294967295, %s869_s28   ;;  %s623_s30 = sadd.s32 4294967294, %s869_s28   ;;  %s869_s28 = sphi %s928_s28, %s23_s28   ;;  %s865_s27 = sphi %s926_s27, %s1134_s27   ;;  %s861_s26 = sphi %s924_s26, %s1133_s26   ;;  %s857_s25 = sphi %s922_s25, %s1132_s25   ;;  %s853_s24 = sphi %s920_s24, %s1131_s24   ;;  %s849_s23 = sphi %s918_s23, %s1130_s23   ;;  %s845_s22 = sphi %s916_s22, %s1129_s22   ;;  %s841_s21 = sphi %s914_s21, %s1128_s21  }
   0xb   : > { %s32_s7 = sadd.s32 1, %s861_s26  ;;  %s35_s8 = sadd.s32 1, %s865_s27 }
   0xc   : > { %p33_p0 = scmp.ge.s32.totalorder %s32_s7, 2  ;;  %p166_p1 = scmp.ne.s32.totalorder %s849_s23, %s845_s22 }
   0xd   : > { %p167_p2 = scmp.eq.s32.totalorder %s622_s29, 3  ;;  %p172_p5 = scmp.ne.s32.totalorder %s845_s22, %s841_s21 }
   0xe   : > { %s1136_s7 = smov (%p33_p0, %s32_s7), 0  ;;  %s1138_s8 = smov (!%p33_p0, %s35_s8), %s865_s27 }
   0xf   : > { %s152_s9 = ssub.s32 %s861_s26, %s1136_s7  ;;  %p965_p3 = por %p167_p2, %p166_p1 }
  0x10   : > { %p37_p4 = scmp.ge.s32.totalorder %s1138_s8, 2  ;;  %p173_p6 = scmp.eq.s32.totalorder %s623_s30, 3 }
  0x11   : > { %p626_p7 = scmp.ge.s32.totalorder %s869_s28, 1  ;;  %p242_p9 = scmp.lt.s32.totalorder %s869_s28, 5 }
  0x12   : > { %s1140_s8 = smov (%p37_p4, %s1138_s8), 0  ;;  %p974_p8 = por %p173_p6, %p172_p5 }
  0x13   : > { %s151_s12 = ssub.s32 %s865_s27, %s1140_s8  ;;  %s156_s13 = sadd.s32 1, %s849_s23 }
  0x14   : > { %s153_s14 = sor.u32 %s152_s9, %s151_s12  ;;  %p243_p10 = pnand %p626_p7, %p242_p9 }
  0x15   : > { %p154_p11 = scmp.eq.s32.totalorder %s153_s14, 0  ;;  %p280_p12 = scmp.lt.s32.totalorder (!%p243_p10), %s857_s25, 1  ;;  %v871_v0 = vmov (!%p243_p10), 0.0   ;;  %vm872_vm0 = vmmov (!%p243_p10), 0   ;;  %vm296_vm1 = vcmask (!%p243_p10), 31744   ;;  %v375_v1 = vld [vmem:[%s1117_s2] sm:$0xff] (!%p243_p10) }
  0x16   : > { %246 = sbr.rel (%p243_p10) target bundleno = 291 (0x123), region = 40  ;;  %p282_p13 = scmp.lt.s32.totalorder (!%p243_p10), %s853_s24, 1  ;;  %649 = vmatprep.subr.mxu0 (!%p243_p10), %v871_v0  ;;  %651 = vmatprep.mubr.msk.f32.mxu0 (!%p243_p10), %vm872_vm0, %v871_v0  ;;  %v873_v3 = vmov (!%p243_p10), 0   ;;  %v378_v4 = vld [vmem:[%s1119_s4 + $0x8] sm:$0xff] (!%p243_p10)  ;;  %v377_v5 = vld [vmem:[%s1119_s4] sm:$0xff] (!%p243_p10)  ;;  %vm300_vm2 = vcmask (!%p243_p10), 1043456  }
  0x17   : > { %s983_s15 = scalar_select %p154_p11, %s849_s23, %s156_s13  }
  0x18   : > { %s1126_s3 = sld [smem:[#allocation9_spill]] (!%p243_p10)  ;;  %656 = vmatprep.mubr.msk.f32.mxu1 (!%p243_p10), %vm296_vm1, %v375_v1  ;;  %741 = vset.pattern.permute.xlu0 (!%p243_p10), %v873_v3  ;;  %s1127_s0 = sld [smem:[#allocation8_spill]] (!%p243_p10)  ;;  %v289_v6 = vld [vmem:[%s1116_s1] sm:$0xff] (!%p243_p10)  ;;  %v376_v8 = vld [vmem:[%s1117_s2 + $0x8] sm:$0xff] (!%p243_p10) }
  0x19   : > { %742 = vset.pattern.permute.xlu1 (!%p243_p10), %v873_v3  ;;  %s638_s14 = sshll.u32 (!%p243_p10), %s857_s25, 1 }
  0x1a   : > { %386 = vperm.xlu1 (!%p243_p10), %742, %v378_v4  }
  0x1d   : > { %s281_s20 = scalar_select %p280_p12, %s857_s25, 1 }
  0x1e   : > { %v290_v2 = vld [vmem:[%s1126_s3] sm:$0xff]  ;;  %s283_s9 = scalar_select %p282_p13, %s853_s24, 1 }
  0x1f   : > { %293 = vperm.xlu0 %741, %v290_v2   ;;  %s629_s12 = sshll.u32 %s281_s20, 1 }
  0x20   : > { %s285_s16 = sadd.s32 %s629_s12, %s283_s9  ;;  %s1014_s9 = sand.u32 1, %s845_s22  }
  0x21   : > { %s630_s17 = sshll.u32 %s285_s16, 2  ;;  %s628_s3 = sshll.u32 %s1014_s9, 4 }
  0x22   : > { %s287_s29 = scalar_lea.vmem %s1127_s0, %s630_s17  ;;  %s627_s12 = sshll.u32 %s1014_s9, 3 }
  0x23   : > { %381 = vperm.xlu0 %741, %v377_v5   ;;  %v288_v7 = vld [vmem:[%s287_s29] sm:$0xf]  ;;  %s640_s16 = sshll.u32 %s857_s25, 2  ;;  %s489_s17 = sadd.s32 %s853_s24, %s638_s14 }
  0x24   : > { %650 = vmatpush3.msk.msra.mxu0 %vm300_vm2, %v288_v7  ;;  %654 = vmatprep.subr.msk.mxu1 %vm300_vm2, %v288_v7  ;;  %s1021_s18 = scalar_lea.vmem [#allocation4], %s628_s3  ;;  %s504_s29 = sadd.s32 %s853_s24, %s640_s16 }
  0x25   : > { %652 = vmatmul.mubr.msk.f32.vlgmr.msra.gmra.mrb[0].mxu0 %vm296_vm1, %v289_v6  ;;  %655 = vmatpush3.msk.msra.mxu1 %vm300_vm2, %v288_v7  ;;  %s507_s19 = sshll.u32 %s1021_s18, 4  ;;  %s639_s30 = sshll.u32 %s489_s17, 7  ;;  %s1025_s19 = int_to_ptr.vmem [resolvable:$true] %s507_s19 }
  0x26   : > { %657 = vmatmul.mubr.msk.f32.vlgmr.msra.gmra.mrb[0].mxu1 %vm296_vm1, %v376_v8  ;;  %s272_s20 = scalar_lea.vmem [#allocation2], %s627_s12  ;;  %s641_s0 = sshll.u32 %s504_s29, 7 }
  0x27   : > { %s493_s13 = sshll.u32 %s272_s20, 4  ;;  %s1030_s14 = scalar_lea.hbm %s1120_s5, %s639_s30  ;;  %s1032_s13 = int_to_ptr.vmem [resolvable:$true] %s493_s13 }
  0x28   : > { %s1037_s16 = scalar_lea.hbm %s1121_s6, %s641_s0  ;;  %s473_s17 = scalar_lea.sflag [#allocation3], %s1014_s9 }
  0x29   : > { %s743_s29 = scalar_lea.vmem %s1032_s13, 128  ;;  %s874_s30 = smov [#allocation2]  }
  0x2a   : > { %p744_p0 = scmp.ne.s32.totalorder %s1032_s13, %s743_s29  ;;  %s747_s25 = sshll.u32 %s874_s30, 4  ;;  %s748_s25 = int_to_ptr.vmem [resolvable:$false] %s747_s25 }
  0x2b   : > { %s749_s3 = scalar_lea.vmem %s748_s25, 256  ;;  %p750_p4 = scmp.lt.s32.totalorder %s1032_s13, %s748_s25 }
  0x2c   : > { %p745_p1 = pnand %p744_p0, %p965_p3  ;;  %p751_p5 = scmp.lt.s32.totalorder %s749_s3, %s743_s29 }
  0x2e   : > { %p746_p2 = pneg %p745_p1  ;;  %p752_p6 = por %p751_p5, %p750_p4 }
  0x30   : > { %p753_p7 = pnand %p752_p6, %p746_p2 }
  0x99   : > { %v387_v10 = vpop.permute.xlu1 %386 }
  0x9e   : > { %v294_v9 = vpop.permute.xlu0 %293 }
  0xa2   : > { %v382_v15 = vpop.permute.xlu0 %381 }
  0xf8   : > { %v370_v11 = vpop.f32.mrb[0].mxu0 }
  0xf9   : > { %v371_v12 = vadd.f32 %v370_v11, %v294_v9  ;;  %v658_v13 = vpop.f32.mrb[0].mxu1  ;;  %v653_v14 = vpop.f32.mrb[1].mxu0 }
  0xfa   : > { %v467_v16 = vadd.f32 %v658_v13, %v387_v10  ;;  %v461_v17 = vpop.f32.mrb[1].mxu1 }
  0xfb   : > { %374 = vst [vmem:[%s272_s20] sm:$0xff] %v371_v12  ;;  %v462_v18 = vadd.f32 %v461_v17, %v382_v15 }
  0xfc   : > { %471 = vst [vmem:[%s1021_s18 + $0x8] sm:$0xff] %v467_v16 }
  0xfd   : > { %756 = shalt.err (!%p753_p7)
}
  0xfe   : > { %s757_s0 = scalar_lea.hbm %s1030_s14, 128  ;;  %s761_s12 = scalar_lea.hbm %s1120_s5, 512 }
  0xff   : > { %p758_p9 = scmp.ne.s32.totalorder %s1030_s14, %s757_s0  ;;  %p762_p12 = scmp.lt.u32.totalorder %s1030_s14, %s1120_s5 }
 0x100   : > { %p763_p13 = scmp.lt.u32.totalorder %s761_s12, %s757_s0  ;;  %p765_p1 = scmp.lt.u32.totalorder %s757_s0, %s1030_s14 }
 0x101   : > { %p759_p10 = pnand %p758_p9, %p965_p3 }
 0x102   : > { %p764_p0 = por %p763_p13, %p762_p12 }
 0x103   : > { %p760_p11 = pneg %p759_p10 }
 0x104   : > { %p766_p2 = por %p765_p1, %p764_p0 }
 0x106   : > { %p767_p4 = pnand %p766_p2, %p760_p11 }
 0x108   : > { %770 = shalt.err (!%p767_p4)
}
 0x109   : > { %659 = dma.vmem_to_hbm [thread:$0]  (%p965_p3), %s1032_s13, 128, %s1030_s14, %s473_s17   ;;  %470 = vst [vmem:[%s1021_s18] sm:$0xff] %v462_v18 }
 0x10a   : > { %s478_s29 = scalar_lea.sflag [#allocation5], %s1014_s9  ;;  %s771_s3 = scalar_lea.vmem %s1025_s19, 256 }
 0x10b   : > { %p772_p5 = scmp.ne.s32.totalorder %s1025_s19, %s771_s3  ;;  %s875_s0 = smov [#allocation4]  }
 0x10c   : > { %s775_s20 = sshll.u32 %s875_s0, 4  ;;  %s776_s20 = int_to_ptr.vmem [resolvable:$false] %s775_s20 }
 0x10d   : > { %p773_p6 = pnand %p772_p5, %p965_p3  ;;  %s777_s24 = scalar_lea.vmem %s776_s20, 512 }
 0x10e   : > { %p778_p9 = scmp.lt.s32.totalorder %s1025_s19, %s776_s20  ;;  %p779_p10 = scmp.lt.s32.totalorder %s777_s24, %s771_s3 }
 0x10f   : > { %p774_p7 = pneg %p773_p6 }
 0x110   : > { %p780_p11 = por %p779_p10, %p778_p9 }
 0x112   : > { %p781_p12 = pnand %p780_p11, %p774_p7 }
 0x114   : > { %784 = shalt.err (!%p781_p12)
}
 0x115   : > { %s785_s18 = scalar_lea.hbm %s1037_s16, 256  ;;  %s789_s17 = scalar_lea.hbm %s1121_s6, 1024 }
 0x116   : > { %p786_p13 = scmp.ne.s32.totalorder %s1037_s16, %s785_s18  ;;  %p790_p2 = scmp.lt.u32.totalorder %s1037_s16, %s1121_s6 }
 0x117   : > { %p791_p4 = scmp.lt.u32.totalorder %s789_s17, %s785_s18  ;;  %p793_p6 = scmp.lt.u32.totalorder %s785_s18, %s1037_s16 }
 0x118   : > { %p787_p0 = pnand %p786_p13, %p965_p3 }
 0x119   : > { %p792_p5 = por %p791_p4, %p790_p2 }
 0x11a   : > { %p788_p1 = pneg %p787_p0 }
 0x11b   : > { %p794_p7 = por %p793_p6, %p792_p5 }
 0x11d   : > { %p795_p9 = pnand %p794_p7, %p788_p1 }
 0x11f   : > { %798 = shalt.err (!%p795_p9)
}
 0x120   : > { %s876_s25 = smov 128   ;;  %s877_s3 = smov 256  }
 0x121   : > { %s878_s0 = smov 8  }
 0x122   : > { %660 = dma.vmem_to_hbm [thread:$0]  (%p965_p3), %s1025_s19, 256, %s1037_s16, %s478_s29, %s876_s25, %s877_s3, %s878_s0  }
 0x123 PF: > { %p670_p10 = scmp.ge.s32.totalorder %s869_s28, 2  ;;  %s522_s20 = sand.u32 1, %s841_s21  }
 0x124   : > { %s523_s24 = scalar_lea.sflag [#allocation3], %s522_s20 }
 0x125   : > { %p664_p11 = pnand %p670_p10, %p974_p8 }
 0x127   : > { %832 = dma.done.wait (!%p664_p11), %s523_s24, 128  }
 0x128   : > { %834 = vsyncadd (!%p664_p11), %s523_s24, 4294967168  ;;  %s532_s18 = scalar_lea.sflag [#allocation5], %s522_s20 }
 0x129   : > { %836 = dma.done.wait (!%p664_p11), %s532_s18, 256  }
 0x12a   : > { %838 = vsyncadd (!%p664_p11), %s532_s18, 4294967040  ;;  %s23_s28 = sadd.s32 1, %s869_s28   ;;  %s1128_s21 = smov %s845_s22 }
 0x12b   : > { %p20_p12 = scmp.ge.s32.totalorder %s23_s28, 6   ;;  %s1129_s22 = smov %s849_s23 }
 0x12c   : > { %s1130_s23 = smov %s983_s15  ;;  %s1131_s24 = smov %s861_s26 }
 0x12d   : > { %s1132_s25 = smov %s865_s27  ;;  %s1133_s26 = smov %s1136_s7 }
 0x12e   : > { %s1134_s27 = smov %s1140_s8  ;;  %22 = sbr.rel (!%p20_p12) target bundleno = 10 (0xa), region = 92 }
 0x135   :  { %537 = vsyncpa [#allocation3], 1 }
 0x136   :  { %539 = vsyncpa [#allocation3 + $0x1], 1 }
 0x137   :  { %540 = vsyncpa [#allocation5], 1 }
 0x138   :  { %542 = vsyncpa [#allocation5 + $0x1], 1 }

</bundles_post_ra>
